<compile_context>
chip_gen: v6e
topology: v6e:2x2x1
jax: 0.10.0
libtpu: 0.0.40
codegen_flags: <defaults>
</compile_context>

<pallas_src>
import jax
import jax.numpy as jnp
from jax.experimental import pallas as pl
from jax.experimental.pallas import tpu as pltpu


def _round_up(x, m):
    return ((x + m - 1) // m) * m


def _make_kernel(matmul_dtype):
    def kernel(x_ref, w1_ref, b1_ref, w2_ref, b2_ref, o_ref):
        x = x_ref[...]
        w1 = w1_ref[...]
        if matmul_dtype is not None:           # bf16 MXU operands, f32 accumulate
            x = x.astype(matmul_dtype)
            w1 = w1.astype(matmul_dtype)
        # Layer 1 on the MXU: (TB, S) @ (S, H) -> (TB, H), f32 accumulation.
        h = jnp.dot(x, w1, preferred_element_type=jnp.float32)
        h = h + b1_ref[...]                    # (1, H) bias broadcast over sublanes
        # Sigmoid in f32: exp and approx reciprocal both land on the EUP slot.
        h = pl.reciprocal(1.0 + jnp.exp(-h), approx=True)
        # Layer 2 (out_features=1): VPU multiply + XLU lane reduction (no 1-wide
        # MXU pass).  b2 is a scalar read from SMEM.
        out = jnp.sum(h * w2_ref[...], axis=-1, keepdims=True) + b2_ref[0, 0]
        o_ref[...] = out.astype(o_ref.dtype)
    return kernel


def value_function_net(x, w1, b1, w2, b2, *, block_b=8192, matmul_dtype=None):
    """Fused forward pass: sigmoid(x @ w1 + b1) @ w2 + b2.

    x  : (B, state_size)        float32
    w1 : (state_size, hidden)   float32
    b1 : (1, hidden)            float32
    w2 : (hidden, 1)            float32
    b2 : (1, 1)                 float32
    matmul_dtype: optional dtype (e.g. jnp.bfloat16) for the layer-1 MXU
                  operands (cast in-kernel); accumulation/epilogue stay f32.
    returns (B, 1) in x.dtype
    """
    B, S = x.shape
    H = w1.shape[1]

    # Batch tile: multiple of 8 (sublane) is enough since batch sits on sublanes.
    tb = min(_round_up(block_b, 8), _round_up(B, 8))
    b_pad = _round_up(B, tb)
    n_b = b_pad // tb

    xp = x if b_pad == B else jnp.pad(x, ((0, b_pad - B), (0, 0)))
    w1c = w1.astype(jnp.float32)
    b1c = b1.reshape(1, H).astype(jnp.float32)
    w2c = w2.reshape(1, H).astype(jnp.float32)   # column -> row (tiny, wrapper-side)
    b2c = b2.reshape(1, 1).astype(jnp.float32)

    out = pl.pallas_call(
        _make_kernel(matmul_dtype),
        out_shape=jax.ShapeDtypeStruct((b_pad, 1), jnp.float32),
        grid=(n_b,),
        in_specs=[
            pl.BlockSpec((tb, S), lambda i: (i, 0)),            # x tile (streamed)
            pl.BlockSpec((S, H), lambda i: (0, 0)),             # W1, VMEM-resident
            pl.BlockSpec((1, H), lambda i: (0, 0)),             # b1 row, resident
            pl.BlockSpec((1, H), lambda i: (0, 0)),             # w2 row, resident
            pl.BlockSpec(memory_space=pltpu.MemorySpace.SMEM),  # b2 scalar in SMEM
        ],
        out_specs=pl.BlockSpec((tb, 1), lambda i: (i, 0)),
        compiler_params=pltpu.CompilerParams(
            dimension_semantics=("parallel",)),                 # megacore on v7x
    )(xp, w1c, b1c, w2c, b2c)

    return out[:B].astype(x.dtype)


def init_params(key, state_size, hidden_size):
    """Deterministic init mimicking nn.Linear's U(-1/sqrt(fan_in), 1/sqrt(fan_in))."""
    k1, k2, k3, k4 = jax.random.split(key, 4)
    lim1 = 1.0 / jnp.sqrt(state_size)
    lim2 = 1.0 / jnp.sqrt(hidden_size)
    w1 = jax.random.uniform(k1, (state_size, hidden_size), jnp.float32, -lim1, lim1)
    b1 = jax.random.uniform(k2, (1, hidden_size), jnp.float32, -lim1, lim1)
    w2 = jax.random.uniform(k3, (hidden_size, 1), jnp.float32, -lim2, lim2)
    b2 = jax.random.uniform(k4, (1, 1), jnp.float32, -lim2, lim2)
    return w1, b1, w2, b2


if __name__ == "__main__":
    batch, state_size, hidden_size = 8, 16, 32

    key = jax.random.PRNGKey(0)
    kx, kp = jax.random.split(key)
    x = jax.random.normal(kx, (batch, state_size), jnp.float32)
    w1, b1, w2, b2 = init_params(kp, state_size, hidden_size)

    # Reference in plain JAX.
    ref = jax.nn.sigmoid(x @ w1 + b1) @ w2 + b2

    # f32 MXU path (default).  Tolerance accounts for the approx EUP reciprocal.
    out = value_function_net(x, w1, b1, w2, b2)
    jax.block_until_ready(out)
    assert out.shape == (batch, 1)
    assert jnp.allclose(out, ref, atol=5e-3, rtol=5e-3)

    # bf16 MXU operands (in-kernel cast, no extra HBM traffic), f32 accumulation.
    out_bf16 = value_function_net(x, w1, b1, w2, b2, matmul_dtype=jnp.bfloat16)
    jax.block_until_ready(out_bf16)
    assert out_bf16.shape == (batch, 1)
    assert jnp.allclose(out_bf16, ref, atol=3e-2, rtol=3e-2)

    # Multi-tile grid + batch-padding path (B not a multiple of the tile).
    x2 = jax.random.normal(kx, (300, state_size), jnp.float32)
    ref2 = jax.nn.sigmoid(x2 @ w1 + b1) @ w2 + b2
    out2 = value_function_net(x2, w1, b1, w2, b2, block_b=128)
    jax.block_until_ready(out2)
    assert out2.shape == (300, 1)
    assert jnp.allclose(out2, ref2, atol=5e-3, rtol=5e-3)

    print("KERNEL_OK")
</pallas_src>

<mosaic_0001>
module attributes {stable_mosaic.version = 11 : i64} {
  func.func @kernel(%arg0: i32, %arg1: memref<8x16xf32, #tpu.memory_space<vmem>>, %arg2: memref<16x32xf32, #tpu.memory_space<vmem>>, %arg3: memref<1x32xf32, #tpu.memory_space<vmem>>, %arg4: memref<1x32xf32, #tpu.memory_space<vmem>>, %arg5: memref<1x1xf32, #tpu.memory_space<smem>>, %arg6: memref<8x1xf32, #tpu.memory_space<vmem>>) attributes {dimension_semantics = [#tpu.dimension_semantics<parallel>], iteration_bounds = array<i64: 1>, scalar_prefetch = 0 : i64, scratch_operands = 0 : i64, tpu.core_type = #tpu.core_type<tc>, window_params = [{transform_indices = @transform_0, window_bounds = array<i64: 8, 16>}, {pipeline_mode = #tpu.pipeline_mode<synchronous>, transform_indices = @transform_1, window_bounds = array<i64: 16, 32>}, {pipeline_mode = #tpu.pipeline_mode<synchronous>, transform_indices = @transform_2, window_bounds = array<i64: 1, 32>}, {pipeline_mode = #tpu.pipeline_mode<synchronous>, transform_indices = @transform_3, window_bounds = array<i64: 1, 32>}, {transform_indices = @transform_4, window_bounds = array<i64: 1, 1>}, {transform_indices = @transform_5, window_bounds = array<i64: 8, 1>}]} {
    %c0 = arith.constant 0 : index
    %c0_0 = arith.constant 0 : index
    %0 = vector.load %arg1[%c0, %c0_0] : memref<8x16xf32, #tpu.memory_space<vmem>>, vector<8x16xf32>
    %c0_1 = arith.constant 0 : index
    %c0_2 = arith.constant 0 : index
    %1 = vector.load %arg2[%c0_1, %c0_2] : memref<16x32xf32, #tpu.memory_space<vmem>>, vector<16x32xf32>
    %cst = arith.constant dense<0.000000e+00> : vector<8x32xf32>
    %2 = tpu.matmul %0, %1, %cst {dimension_numbers = #tpu.dot_dimension_numbers<[1], [0], [0], [1], [0, 0, 1, 1], [], []>} : vector<8x16xf32>, vector<16x32xf32>, vector<8x32xf32> -> vector<8x32xf32>
    %c0_3 = arith.constant 0 : index
    %c0_4 = arith.constant 0 : index
    %3 = vector.load %arg3[%c0_3, %c0_4] : memref<1x32xf32, #tpu.memory_space<vmem>>, vector<1x32xf32>
    %4 = vector.broadcast %3 : vector<1x32xf32> to vector<8x32xf32>
    %5 = arith.addf %2, %4 : vector<8x32xf32>
    %cst_5 = arith.constant 0.000000e+00 : f32
    %6 = vector.broadcast %cst_5 : f32 to vector<8x32xf32>
    %7 = arith.subf %6, %5 : vector<8x32xf32>
    %8 = math.exp %7 : vector<8x32xf32>
    %cst_6 = arith.constant 1.000000e+00 : f32
    %9 = vector.broadcast %cst_6 : f32 to vector<8x32xf32>
    %10 = arith.addf %9, %8 : vector<8x32xf32>
    %11 = tpu.reciprocal %10 {approx = true} : vector<8x32xf32> -> vector<8x32xf32>
    %c0_7 = arith.constant 0 : index
    %c0_8 = arith.constant 0 : index
    %12 = vector.load %arg4[%c0_7, %c0_8] : memref<1x32xf32, #tpu.memory_space<vmem>>, vector<1x32xf32>
    %13 = vector.broadcast %12 : vector<1x32xf32> to vector<8x32xf32>
    %14 = arith.mulf %11, %13 : vector<8x32xf32>
    %cst_9 = arith.constant dense<0.000000e+00> : vector<8xf32>
    %15 = vector.multi_reduction <add>, %14, %cst_9 [1] : vector<8x32xf32> to vector<8xf32>
    %16 = vector.shape_cast %15 : vector<8xf32> to vector<8x1xf32>
    %c0_10 = arith.constant 0 : index
    %c0_11 = arith.constant 0 : index
    %17 = memref.load %arg5[%c0_10, %c0_11] : memref<1x1xf32, #tpu.memory_space<smem>>
    %18 = vector.broadcast %17 : f32 to vector<8x1xf32>
    %19 = arith.addf %16, %18 : vector<8x1xf32>
    %c0_12 = arith.constant 0 : index
    %c0_13 = arith.constant 0 : index
    %20 = vector.load %arg6[%c0_12, %c0_13] : memref<8x1xf32, #tpu.memory_space<vmem>>, vector<8x1xf32>
    tpu.vector_store %arg6[%c0_12, %c0_13], %19 {strides = array<i32>} : memref<8x1xf32, #tpu.memory_space<vmem>>, vector<8x1xf32>,
    return
  }
  func.func @transform_0(%arg0: i32) -> (i32, i32) {
    %c0_i32 = arith.constant 0 : i32
    %c0_i32_0 = arith.constant 0 : i32
    return %arg0, %c0_i32 : i32, i32
  }
  func.func @transform_1(%arg0: i32) -> (i32, i32) {
    %c0_i32 = arith.constant 0 : i32
    %c0_i32_0 = arith.constant 0 : i32
    %c0_i32_1 = arith.constant 0 : i32
    return %c0_i32, %c0_i32_0 : i32, i32
  }
  func.func @transform_2(%arg0: i32) -> (i32, i32) {
    %c0_i32 = arith.constant 0 : i32
    %c0_i32_0 = arith.constant 0 : i32
    %c0_i32_1 = arith.constant 0 : i32
    return %c0_i32, %c0_i32_0 : i32, i32
  }
  func.func @transform_3(%arg0: i32) -> (i32, i32) {
    %c0_i32 = arith.constant 0 : i32
    %c0_i32_0 = arith.constant 0 : i32
    %c0_i32_1 = arith.constant 0 : i32
    return %c0_i32, %c0_i32_0 : i32, i32
  }
  func.func @transform_4(%arg0: i32) -> (i32, i32) {
    %c0_i32 = arith.constant 0 : i32
    %c0_i32_0 = arith.constant 0 : i32
    %c0_i32_1 = arith.constant 0 : i32
    return %c0_i32, %c0_i32_0 : i32, i32
  }
  func.func @transform_5(%arg0: i32) -> (i32, i32) {
    %c0_i32 = arith.constant 0 : i32
    %c0_i32_0 = arith.constant 0 : i32
    return %arg0, %c0_i32 : i32, i32
  }
}

</mosaic_0001>

<bundles_post_ra>
// kernel: tpu_custom_call.1
= control target key start
LH: loop header
LB: loop body
LE: loop exit
PB: predicated region body
PF: predicated region fallthrough
CT: control target
= control target key end

     0   :  { %11 = vsyncpa [#allocation4], 0  ;;  %s280_s0 = inlined_call_operand.hbm [shape: f32[8,16], index: 0, kind: input, shape index: {}]   ;;  %s281_s1 = inlined_call_operand.hbm [shape: f32[16,32], index: 1, kind: input, shape index: {}]   ;;  %s282_s2 = inlined_call_operand.vmem [shape: f32[1,32], index: 2, kind: input, shape index: {}]   ;;  %s283_s3 = inlined_call_operand.vmem [shape: f32[1,32], index: 3, kind: input, shape index: {}]   ;;  %s284_s4 = inlined_call_operand.<no memory space> [shape: f32[1,1], index: 4, kind: input, shape index: {}]   ;;  %s285_s5 = inlined_call_operand.vmem [shape: f32[8,1], index: 5, kind: output, shape index: {}]  }
   0x1   :  { %12 = vsyncpa [#allocation6], 0  ;;  %s226_s18 = smov [#allocation3]   ;;  %s227_s20 = smov [#allocation5]  }
   0x2   :  { %s19_s19 = sshll.u32 %s226_s18, 4  ;;  %s28_s21 = sshll.u32 %s227_s20, 4  ;;  %s20_s19 = int_to_ptr.vmem [resolvable:$true] %s19_s19  ;;  %s29_s21 = int_to_ptr.vmem [resolvable:$true] %s28_s21 }
   0x3   :  { %s190_s22 = scalar_lea.vmem %s20_s19, 128  ;;  %p195_p1 = scmp.lt.s32.totalorder %s20_s19, %s20_s19 }
   0x4   :  { %p191_p0 = scmp.ne.s32.totalorder %s20_s19, %s190_s22  ;;  %p196_p2 = scmp.lt.s32.totalorder %s190_s22, %s190_s22 }
   0x6   :  { %p197_p3 = por %p196_p2, %p195_p1 }
   0x8   :  { %p198_p4 = pnand %p197_p3, %p191_p0 }
   0xa   :  { %201 = shalt.err (!%p198_p4)
}
   0xb   :  { %22 = dma.hbm_to_vmem [thread:$0]  %s280_s0, 128, %s20_s19, [#allocation4]  }
   0xc   :  { %s210_s25 = scalar_lea.vmem %s29_s21, 256  ;;  %p215_p6 = scmp.lt.s32.totalorder %s29_s21, %s29_s21 }
   0xd   :  { %p211_p5 = scmp.ne.s32.totalorder %s29_s21, %s210_s25  ;;  %p216_p7 = scmp.lt.s32.totalorder %s210_s25, %s210_s25 }
   0xf   :  { %p217_p8 = por %p216_p7, %p215_p6 }
  0x11   :  { %p218_p9 = pnand %p217_p8, %p211_p5 }
  0x13   :  { %221 = shalt.err (!%p218_p9)
}
  0x14   :  { %s228_s26 = smov 128   ;;  %s229_s27 = smov 8  }
  0x15   :  { %34 = dma.hbm_to_vmem [thread:$0]  %s281_s1, 256, %s29_s21, [#allocation6], %s228_s26, %s228_s26, %s229_s27  }
  0x16   :  { %222 = dma.done.wait [#allocation4], 128  }
  0x17   :  { %223 = vsyncadd [#allocation4], 4294967168 }
  0x18   :  { %224 = dma.done.wait [#allocation6], 256  }
  0x19   :  { %225 = vsyncadd [#allocation6], 4294967040  ;;  %v230_v0 = vmov 0.0   ;;  %vm231_vm0 = vmmov 0   ;;  %v49_v1 = vld [vmem:[#allocation5 + $0x8] sm:$0xff]  ;;  %v48_v2 = vld [vmem:[#allocation5] sm:$0xff]  ;;  %v149_v16 = vstv %s284_s4 }
  0x1a   :  { %165 = vmatprep.subr.mxu0 %v230_v0  ;;  %169 = vmatprep.mubr.msk.f32.mxu0 %vm231_vm0, %v230_v0  ;;  %v47_v3 = vld [vmem:[#allocation3] sm:$0xff]  ;;  %vm57_vm1 = vcmask 130048   ;;  %vm144_vm2 = vcmask 261120   ;;  %vm151_vm3 = vcmask 7168  }
  0x1b   :  { %166 = vmatpush3.msra.mxu0 %v49_v1  ;;  %v159_v4 = vld [vmem:[%s282_s2] ss:$0 sm:$0xff] }
  0x1c   :  { %167 = vmatprep.subr.mxu0 %v230_v0  ;;  %v161_v12 = vld [vmem:[%s283_s3] ss:$0 sm:$0xff] }
  0x1d   :  { %168 = vmatpush3.msra.mxu0 %v48_v2 }
  0x1e   :  { %170 = vmatmul.mubr.msk.f32.vlgmr.msra.gmra.mxu0 %vm57_vm1, %v47_v3 }
  0xde   :  { %v127_v5 = vpop.f32.mrf.mxu0 }
  0xdf   :  { %v128_v6 = vadd.f32 %v159_v4, %v127_v5 }
  0xe0   :  { %v171_v7 = vpop.f32.mrf.mxu0 }
  0xe1   :  { %v131_v8 = vsub.f32 0.0, %v128_v6 }
  0xe3   :  { %v132_v9 = vmul.f32 1.442695, %v131_v8 }
  0xe5   :  { %178 = vpow2.f32 %v132_v9 }
  0xf2   :  { %v179_v10 = vpop.eup %178 }
  0xf3   :  { %v134_v11 = vadd.f32 1.0, %v179_v10 }
  0xf5   :  { %180 = vrcp.f32 %v134_v11 }
 0x102   :  { %v181_v13 = vpop.eup %180 }
 0x103   :  { %v143_v14 = vmul.f32 %v181_v13, %v161_v12 }
 0x105   :  { %v145_v15 = vsel %vm144_vm2, %v143_v14, 0.0 }
 0x106   :  { %146 = vadd.xlane.f32.xlu0 %v145_v15 }
 0x18f   :  { %v147_v17 = vpop.xlane.xlu0 %146 }
 0x190   :  { %v150_v18 = vadd.f32 %v149_v16, %v147_v17 }
 0x192   :  { %152 = vst.msk [vmem:[%s285_s5] sm:$0xff] %vm151_vm3, %v150_v18 }
 0x193   :  { %157 = vsyncpa [#allocation4], 1 }
 0x194   :  { %158 = vsyncpa [#allocation6], 1 }

</bundles_post_ra>
